<compile_context>
chip_gen: v6e
topology: v6e:2x2x1
jax: 0.10.0
libtpu: 0.0.40
codegen_flags: <defaults>
</compile_context>

<pallas_src>
import functools

import jax
import jax.numpy as jnp
from jax.experimental import pallas as pl
from jax.experimental.pallas import tpu as pltpu

_EPS = 1e-5
_LANE = 128


def _pad_to(n, m):
    return ((n + m - 1) // m) * m


def _full_spec(shape):
    # Whole-array VMEM block (grid is empty -> index_map takes no args).
    return pl.BlockSpec(shape, lambda: (0,) * len(shape))


# ----------------------------- fused Pallas kernel ------------------------- #

def _make_kernel(num_hidden, layer_dims, din0, batch):
    """num_hidden x (Linear + BN + ReLU) then Linear, weights streamed from HBM.

    Ref layout:
      x, [gamma_i, beta_i]*H, b_final, [w_0..w_H (HBM)], out, wbuf, sem, xpad
    layer_dims[i] = (Kp_i, Np_i): lane-padded dims of each Linear's weight.
    """
    num_layers = num_hidden + 1

    def kernel(*refs):
        idx = 0
        x_ref = refs[idx]; idx += 1
        gb_refs = []
        for _ in range(num_hidden):
            gb_refs.append((refs[idx], refs[idx + 1])); idx += 2
        b_fin_ref = refs[idx]; idx += 1
        w_hbm = [refs[idx + i] for i in range(num_layers)]; idx += num_layers
        o_ref = refs[idx]; idx += 1
        wbuf, sem, xpad = refs[idx], refs[idx + 1], refs[idx + 2]

        pending = [None, None]

        def fetch(layer, slot):
            kp, np_ = layer_dims[layer]
            cp = pltpu.make_async_copy(
                w_hbm[layer], wbuf.at[slot, :kp, :np_], sem.at[slot])
            cp.start()
            pending[slot] = cp

        # Prefetch layer 0's weight while x is staged/padded in VMEM.
        fetch(0, 0)

        # Zero-pad x into VMEM: padded K lanes must be exactly 0 so padding
        # stays mathematically inert through every layer.
        k0p = layer_dims[0][0]
        if din0 == k0p:
            xpad[...] = x_ref[...]
        else:
            xpad[...] = jnp.zeros_like(xpad)
            xpad[:, :din0] = x_ref[...]
        h = xpad[...].astype(jnp.bfloat16)  # single cast; MXU consumes bf16

        inv_b = 1.0 / batch
        for i in range(num_layers):
            slot = i % 2
            pending[slot].wait()
            if i + 1 < num_layers:
                fetch(i + 1, 1 - slot)  # overlap next weight DMA with compute

            kp, np_ = layer_dims[i]
            w = wbuf[slot, :kp, :np_]
            y = jnp.dot(h, w, preferred_element_type=jnp.float32)

            if i < num_hidden:
                g_ref, beta_ref = gb_refs[i]
                # Training-mode BN, single-pass stats; hidden Linear bias
                # omitted (cancels exactly under the batch-mean subtraction).
                mean = jnp.sum(y, axis=0, keepdims=True) * inv_b
                ex2 = jnp.sum(y * y, axis=0, keepdims=True) * inv_b
                var = jnp.maximum(ex2 - mean * mean, 0.0)
                scale = g_ref[...] * jax.lax.rsqrt(var + _EPS)
                shift = beta_ref[...] - scale * mean
                h = jnp.maximum(scale * y + shift, 0.0).astype(jnp.bfloat16)
            else:
                o_ref[...] = y + b_fin_ref[...]

    return kernel


# ------------------------------- forward pass ------------------------------ #

@functools.partial(jax.jit, static_argnames=("feat_dim", "trim"))
def fc_generator_forward(x, params, feat_dim, trim=True):
    hidden_w = params["hidden_w"]
    hidden_g = params["hidden_gamma"]
    hidden_b = params["hidden_beta"]
    w_fin = params["final_w"]
    b_fin = params["final_b"]
    num_hidden = len(hidden_w)

    weights = list(hidden_w) + [w_fin]
    layer_dims = [tuple(w.shape) for w in weights]  # already lane-padded
    num_layers = len(weights)
    k_max = max(k for k, _ in layer_dims)
    n_max = max(n for _, n in layer_dims)
    k0p = layer_dims[0][0]
    out_p = layer_dims[-1][1]

    x = x.astype(jnp.float32)
    B, din0 = x.shape

    inputs = [x]
    in_specs = [_full_spec(x.shape)]
    for g, bb in zip(hidden_g, hidden_b):
        inputs += [g, bb]
        in_specs += [_full_spec(g.shape), _full_spec(bb.shape)]
    inputs.append(b_fin)
    in_specs.append(_full_spec(b_fin.shape))
    for w in weights:
        inputs.append(w)
        in_specs.append(pl.BlockSpec(memory_space=pl.ANY))  # stays in HBM; streamed

    scratch_shapes = [
        pltpu.VMEM((2, k_max, n_max), jnp.bfloat16),   # double-buffered weights
        pltpu.SemaphoreType.DMA((2,)),
        pltpu.VMEM((B, k0p), jnp.float32),             # zero-padded x staging
    ]

    # Cost estimate (hint to XLA's scheduler) + scoped-VMEM budget.
    flops = 2 * B * sum(k * n for k, n in layer_dims)
    weight_bytes = sum(int(w.size) * w.dtype.itemsize for w in weights)
    small_bytes = sum(int(a.size) * 4
                      for a in [x, b_fin] + list(hidden_g) + list(hidden_b))
    bytes_accessed = weight_bytes + small_bytes + B * out_p * 4
    transcendentals = sum(n for _, n in layer_dims[:num_hidden])  # rsqrt / feature
    working_set = (2 * k_max * n_max * 2        # weight double-buffer (bf16)
                   + B * k0p * 4                # x staging
                   + 4 * B * n_max * 4          # y / h / BN temporaries (f32)
                   + small_bytes + B * out_p * 4)
    vmem_limit = int(min(max(working_set + (16 << 20), 32 << 20), 48 << 20))

    out = pl.pallas_call(
        _make_kernel(num_hidden, layer_dims, din0, B),
        out_shape=jax.ShapeDtypeStruct((B, out_p), jnp.float32),
        in_specs=in_specs,
        out_specs=_full_spec((B, out_p)),
        scratch_shapes=scratch_shapes,
        compiler_params=pltpu.CompilerParams(vmem_limit_bytes=vmem_limit),
        cost_estimate=pl.CostEstimate(flops=flops,
                                      transcendentals=transcendentals,
                                      bytes_accessed=bytes_accessed),
    )(*inputs)

    # Consumers that can take the lane-dense, multiple-of-128 output (padded
    # columns are exactly 0) should pass trim=False and skip this slice pass.
    return out[:, :feat_dim] if trim else out


# ---------------------------- parameter handling ---------------------------- #

def init_fc_generator_params(key, latent_dim, feat_dim, hdims):
    """PyTorch-faithful raw params: Linear U(-1/sqrt(fan_in), +), BN gamma=1, beta=0."""
    dims = [latent_dim] + list(hdims) + [feat_dim]
    raw = []
    for i in range(len(dims) - 1):
        din, dout = dims[i], dims[i + 1]
        key, kw, kb = jax.random.split(key, 3)
        bound = 1.0 / (din ** 0.5)
        w = jax.random.uniform(kw, (din, dout), jnp.float32, -bound, bound)
        b = jax.random.uniform(kb, (1, dout), jnp.float32, -bound, bound)
        if i < len(dims) - 2:
            raw.append(("hidden", w, b,
                        jnp.ones((1, dout), jnp.float32),
                        jnp.zeros((1, dout), jnp.float32)))
        else:
            raw.append(("final", w, b))
    return raw


def pack_params(raw):
    """Zero-pad every weight dim to a multiple of 128, cast weights to bf16,
    drop redundant hidden biases. Zero padding keeps padded lanes exactly 0."""
    hidden_w, hidden_g, hidden_b = [], [], []
    final_w = final_b = None
    for layer in raw:
        if layer[0] == "hidden":
            _, w, _b, g, beta = layer
            din, dout = w.shape
            dinp, doutp = _pad_to(din, _LANE), _pad_to(dout, _LANE)
            wp = jnp.zeros((dinp, doutp), jnp.bfloat16)
            wp = wp.at[:din, :dout].set(w.astype(jnp.bfloat16))
            gp = jnp.zeros((1, doutp), jnp.float32).at[:, :dout].set(g)
            bp = jnp.zeros((1, doutp), jnp.float32).at[:, :dout].set(beta)
            hidden_w.append(wp)
            hidden_g.append(gp)
            hidden_b.append(bp)
        else:
            _, w, b = layer
            din, dout = w.shape
            dinp, doutp = _pad_to(din, _LANE), _pad_to(dout, _LANE)
            final_w = jnp.zeros((dinp, doutp), jnp.bfloat16)
            final_w = final_w.at[:din, :dout].set(w.astype(jnp.bfloat16))
            final_b = jnp.zeros((1, doutp), jnp.float32).at[:, :dout].set(b)
    return {
        "hidden_w": hidden_w,
        "hidden_gamma": hidden_g,
        "hidden_beta": hidden_b,
        "final_w": final_w,
        "final_b": final_b,
    }


# ------------------------------- reference ---------------------------------- #

def fc_generator_ref(x, raw_params):
    """Pure-JAX reference mirroring the PyTorch forward (training-mode BN,
    two-pass stats, hidden bias kept). Matmuls use bf16 operands like the kernel."""

    def mm(a, w):
        return jnp.dot(a.astype(jnp.bfloat16), w.astype(jnp.bfloat16),
                       preferred_element_type=jnp.float32)

    for layer in raw_params:
        if layer[0] == "hidden":
            _, w, b, g, beta = layer
            y = mm(x, w) + b
            mean = jnp.mean(y, axis=0, keepdims=True)
            var = jnp.mean((y - mean) ** 2, axis=0, keepdims=True)
            y = (y - mean) / jnp.sqrt(var + _EPS)
            x = jnp.maximum(g * y + beta, 0.0)
        else:
            _, w, b = layer
            x = mm(x, w) + b
    return x


if __name__ == "__main__":
    # Small shapes consistent with the module: x is (batch, latent_dim).
    B, LATENT, FEAT = 8, 16, 64
    HDIMS = [32, 32]

    key = jax.random.PRNGKey(0)
    key_x, key_p = jax.random.split(key)
    x = jax.random.normal(key_x, (B, LATENT), jnp.float32)

    raw = init_fc_generator_params(key_p, LATENT, FEAT, HDIMS)
    params = pack_params(raw)

    # Lane-dense padded output (no post-call slice pass); slice only for the check.
    out_pad = fc_generator_forward(x, params, feat_dim=FEAT, trim=False)
    out_pad = jax.block_until_ready(out_pad)
    out = out_pad[:, :FEAT]

    ref = fc_generator_ref(x, raw)
    assert out.shape == (B, FEAT), out.shape
    assert bool(jnp.all(out_pad[:, FEAT:] == 0.0)), "padded lanes not zero"
    max_err = float(jnp.max(jnp.abs(out - ref)))
    assert jnp.allclose(out, ref, atol=2e-2, rtol=2e-2), f"mismatch: {max_err}"

    print("KERNEL_OK")
</pallas_src>

<mosaic_0001>
module attributes {stable_mosaic.version = 11 : i64} {
  func.func @kernel(%arg0: memref<8x16xf32, #tpu.memory_space<vmem>>, %arg1: memref<1x128xf32, #tpu.memory_space<vmem>>, %arg2: memref<1x128xf32, #tpu.memory_space<vmem>>, %arg3: memref<1x128xf32, #tpu.memory_space<vmem>>, %arg4: memref<1x128xf32, #tpu.memory_space<vmem>>, %arg5: memref<1x128xf32, #tpu.memory_space<vmem>>, %arg6: memref<128x128xbf16, #tpu.memory_space<any>>, %arg7: memref<128x128xbf16, #tpu.memory_space<any>>, %arg8: memref<128x128xbf16, #tpu.memory_space<any>>, %arg9: memref<8x128xf32, #tpu.memory_space<vmem>>, %arg10: memref<2x128x128xbf16, #tpu.memory_space<vmem>>, %arg11: memref<2x!tpu.dma_semaphore, #tpu.memory_space<semaphore_mem>>, %arg12: memref<8x128xf32, #tpu.memory_space<vmem>>) attributes {dimension_semantics = [], scalar_prefetch = 0 : i64, scratch_operands = 3 : i64, tpu.core_type = #tpu.core_type<tc>} {
    %c0_i32 = arith.constant 0 : i32
    %c0_i32_0 = arith.constant 0 : i32
    %c0_i32_1 = arith.constant 0 : i32
    %c0_i32_2 = arith.constant 0 : i32
    %0 = tpu.memref_slice %arg10[%c0_i32, %c0_i32_1, %c0_i32_2] : memref<2x128x128xbf16, #tpu.memory_space<vmem>> -> memref<1x128x128xbf16, #tpu.memory_space<vmem>>
    %1 = tpu.memref_squeeze %0 : memref<1x128x128xbf16, #tpu.memory_space<vmem>> -> memref<128x128xbf16, #tpu.memory_space<vmem>>
    %2 = tpu.memref_slice %arg11[%c0_i32_0] : memref<2x!tpu.dma_semaphore, #tpu.memory_space<semaphore_mem>> -> memref<1x!tpu.dma_semaphore, #tpu.memory_space<semaphore_mem>>
    %3 = tpu.memref_squeeze %2 : memref<1x!tpu.dma_semaphore, #tpu.memory_space<semaphore_mem>> -> memref<!tpu.dma_semaphore, #tpu.memory_space<semaphore_mem>>
    tpu.enqueue_dma source(%arg6 : memref<128x128xbf16, #tpu.memory_space<any>>) target(%1 : memref<128x128xbf16, #tpu.memory_space<vmem>>) target_semaphore(%3 : memref<!tpu.dma_semaphore, #tpu.memory_space<semaphore_mem>>)
    %cst = arith.constant 0.000000e+00 : f32
    %4 = vector.broadcast %cst : f32 to vector<8x128xf32>
    %c0 = arith.constant 0 : index
    %c0_3 = arith.constant 0 : index
    %5 = vector.load %arg12[%c0, %c0_3] : memref<8x128xf32, #tpu.memory_space<vmem>>, vector<8x128xf32>
    tpu.vector_store %arg12[%c0, %c0_3], %4 {strides = array<i32>} : memref<8x128xf32, #tpu.memory_space<vmem>>, vector<8x128xf32>,
    %c0_4 = arith.constant 0 : index
    %c0_5 = arith.constant 0 : index
    %6 = vector.load %arg0[%c0_4, %c0_5] : memref<8x16xf32, #tpu.memory_space<vmem>>, vector<8x16xf32>
    %c0_6 = arith.constant 0 : index
    %c0_7 = arith.constant 0 : index
    %7 = vector.load %arg12[%c0_6, %c0_7] : memref<8x128xf32, #tpu.memory_space<vmem>>, vector<8x16xf32>
    tpu.vector_store %arg12[%c0_6, %c0_7], %6 {strides = array<i32>} : memref<8x128xf32, #tpu.memory_space<vmem>>, vector<8x16xf32>,
    %c0_8 = arith.constant 0 : index
    %c0_9 = arith.constant 0 : index
    %8 = vector.load %arg12[%c0_8, %c0_9] : memref<8x128xf32, #tpu.memory_space<vmem>>, vector<8x128xf32>
    %9 = arith.truncf %8 : vector<8x128xf32> to vector<8x128xbf16>
    %c0_i32_10 = arith.constant 0 : i32
    %c0_i32_11 = arith.constant 0 : i32
    %c0_i32_12 = arith.constant 0 : i32
    %c0_i32_13 = arith.constant 0 : i32
    %10 = tpu.memref_slice %arg10[%c0_i32_10, %c0_i32_12, %c0_i32_13] : memref<2x128x128xbf16, #tpu.memory_space<vmem>> -> memref<1x128x128xbf16, #tpu.memory_space<vmem>>
    %11 = tpu.memref_squeeze %10 : memref<1x128x128xbf16, #tpu.memory_space<vmem>> -> memref<128x128xbf16, #tpu.memory_space<vmem>>
    %12 = tpu.memref_slice %arg11[%c0_i32_11] : memref<2x!tpu.dma_semaphore, #tpu.memory_space<semaphore_mem>> -> memref<1x!tpu.dma_semaphore, #tpu.memory_space<semaphore_mem>>
    %13 = tpu.memref_squeeze %12 : memref<1x!tpu.dma_semaphore, #tpu.memory_space<semaphore_mem>> -> memref<!tpu.dma_semaphore, #tpu.memory_space<semaphore_mem>>
    tpu.wait_dma2 semaphore(%13 : memref<!tpu.dma_semaphore, #tpu.memory_space<semaphore_mem>>) src(%arg6 : memref<128x128xbf16, #tpu.memory_space<any>>) dst(%11 : memref<128x128xbf16, #tpu.memory_space<vmem>>)
    %c1_i32 = arith.constant 1 : i32
    %c1_i32_14 = arith.constant 1 : i32
    %c0_i32_15 = arith.constant 0 : i32
    %c0_i32_16 = arith.constant 0 : i32
    %14 = tpu.memref_slice %arg10[%c1_i32, %c0_i32_15, %c0_i32_16] : memref<2x128x128xbf16, #tpu.memory_space<vmem>> -> memref<1x128x128xbf16, #tpu.memory_space<vmem>>
    %15 = tpu.memref_squeeze %14 : memref<1x128x128xbf16, #tpu.memory_space<vmem>> -> memref<128x128xbf16, #tpu.memory_space<vmem>>
    %16 = tpu.memref_slice %arg11[%c1_i32_14] : memref<2x!tpu.dma_semaphore, #tpu.memory_space<semaphore_mem>> -> memref<1x!tpu.dma_semaphore, #tpu.memory_space<semaphore_mem>>
    %17 = tpu.memref_squeeze %16 : memref<1x!tpu.dma_semaphore, #tpu.memory_space<semaphore_mem>> -> memref<!tpu.dma_semaphore, #tpu.memory_space<semaphore_mem>>
    tpu.enqueue_dma source(%arg7 : memref<128x128xbf16, #tpu.memory_space<any>>) target(%15 : memref<128x128xbf16, #tpu.memory_space<vmem>>) target_semaphore(%17 : memref<!tpu.dma_semaphore, #tpu.memory_space<semaphore_mem>>)
    %c0_17 = arith.constant 0 : index
    %c0_18 = arith.constant 0 : index
    %c0_19 = arith.constant 0 : index
    %18 = vector.load %arg10[%c0_17, %c0_18, %c0_19] : memref<2x128x128xbf16, #tpu.memory_space<vmem>>, vector<1x128x128xbf16>
    %19 = vector.shape_cast %18 : vector<1x128x128xbf16> to vector<128x128xbf16>
    %cst_20 = arith.constant dense<0.000000e+00> : vector<8x128xf32>
    %20 = tpu.matmul %9, %19, %cst_20 {dimension_numbers = #tpu.dot_dimension_numbers<[1], [0], [0], [1], [0, 0, 1, 1], [], []>} : vector<8x128xbf16>, vector<128x128xbf16>, vector<8x128xf32> -> vector<8x128xf32>
    %cst_21 = arith.constant dense<0.000000e+00> : vector<128xf32>
    %21 = vector.multi_reduction <add>, %20, %cst_21 [0] : vector<8x128xf32> to vector<128xf32>
    %22 = vector.shape_cast %21 : vector<128xf32> to vector<1x128xf32>
    %cst_22 = arith.constant 1.250000e-01 : f32
    %23 = vector.broadcast %cst_22 : f32 to vector<1x128xf32>
    %24 = arith.mulf %22, %23 : vector<1x128xf32>
    %25 = arith.mulf %20, %20 : vector<8x128xf32>
    %cst_23 = arith.constant dense<0.000000e+00> : vector<128xf32>
    %26 = vector.multi_reduction <add>, %25, %cst_23 [0] : vector<8x128xf32> to vector<128xf32>
    %27 = vector.shape_cast %26 : vector<128xf32> to vector<1x128xf32>
    %cst_24 = arith.constant 1.250000e-01 : f32
    %28 = vector.broadcast %cst_24 : f32 to vector<1x128xf32>
    %29 = arith.mulf %27, %28 : vector<1x128xf32>
    %30 = arith.mulf %24, %24 : vector<1x128xf32>
    %31 = arith.subf %29, %30 : vector<1x128xf32>
    %cst_25 = arith.constant 0.000000e+00 : f32
    %32 = vector.broadcast %cst_25 : f32 to vector<1x128xf32>
    %33 = arith.maximumf %31, %32 : vector<1x128xf32>
    %c0_26 = arith.constant 0 : index
    %c0_27 = arith.constant 0 : index
    %34 = vector.load %arg1[%c0_26, %c0_27] : memref<1x128xf32, #tpu.memory_space<vmem>>, vector<1x128xf32>
    %cst_28 = arith.constant 9.99999974E-6 : f32
    %35 = vector.broadcast %cst_28 : f32 to vector<1x128xf32>
    %36 = arith.addf %33, %35 : vector<1x128xf32>
    %37 = math.rsqrt %36 : vector<1x128xf32>
    %38 = arith.mulf %34, %37 : vector<1x128xf32>
    %c0_29 = arith.constant 0 : index
    %c0_30 = arith.constant 0 : index
    %39 = vector.load %arg2[%c0_29, %c0_30] : memref<1x128xf32, #tpu.memory_space<vmem>>, vector<1x128xf32>
    %40 = arith.mulf %38, %24 : vector<1x128xf32>
    %41 = arith.subf %39, %40 : vector<1x128xf32>
    %42 = vector.broadcast %38 : vector<1x128xf32> to vector<8x128xf32>
    %43 = arith.mulf %42, %20 : vector<8x128xf32>
    %44 = vector.broadcast %41 : vector<1x128xf32> to vector<8x128xf32>
    %45 = arith.addf %43, %44 : vector<8x128xf32>
    %cst_31 = arith.constant 0.000000e+00 : f32
    %46 = vector.broadcast %cst_31 : f32 to vector<8x128xf32>
    %47 = arith.maximumf %45, %46 : vector<8x128xf32>
    %48 = arith.truncf %47 : vector<8x128xf32> to vector<8x128xbf16>
    %c1_i32_32 = arith.constant 1 : i32
    %c1_i32_33 = arith.constant 1 : i32
    %c0_i32_34 = arith.constant 0 : i32
    %c0_i32_35 = arith.constant 0 : i32
    %49 = tpu.memref_slice %arg10[%c1_i32_32, %c0_i32_34, %c0_i32_35] : memref<2x128x128xbf16, #tpu.memory_space<vmem>> -> memref<1x128x128xbf16, #tpu.memory_space<vmem>>
    %50 = tpu.memref_squeeze %49 : memref<1x128x128xbf16, #tpu.memory_space<vmem>> -> memref<128x128xbf16, #tpu.memory_space<vmem>>
    %51 = tpu.memref_slice %arg11[%c1_i32_33] : memref<2x!tpu.dma_semaphore, #tpu.memory_space<semaphore_mem>> -> memref<1x!tpu.dma_semaphore, #tpu.memory_space<semaphore_mem>>
    %52 = tpu.memref_squeeze %51 : memref<1x!tpu.dma_semaphore, #tpu.memory_space<semaphore_mem>> -> memref<!tpu.dma_semaphore, #tpu.memory_space<semaphore_mem>>
    tpu.wait_dma2 semaphore(%52 : memref<!tpu.dma_semaphore, #tpu.memory_space<semaphore_mem>>) src(%arg7 : memref<128x128xbf16, #tpu.memory_space<any>>) dst(%50 : memref<128x128xbf16, #tpu.memory_space<vmem>>)
    %c0_i32_36 = arith.constant 0 : i32
    %c0_i32_37 = arith.constant 0 : i32
    %c0_i32_38 = arith.constant 0 : i32
    %c0_i32_39 = arith.constant 0 : i32
    %53 = tpu.memref_slice %arg10[%c0_i32_36, %c0_i32_38, %c0_i32_39] : memref<2x128x128xbf16, #tpu.memory_space<vmem>> -> memref<1x128x128xbf16, #tpu.memory_space<vmem>>
    %54 = tpu.memref_squeeze %53 : memref<1x128x128xbf16, #tpu.memory_space<vmem>> -> memref<128x128xbf16, #tpu.memory_space<vmem>>
    %55 = tpu.memref_slice %arg11[%c0_i32_37] : memref<2x!tpu.dma_semaphore, #tpu.memory_space<semaphore_mem>> -> memref<1x!tpu.dma_semaphore, #tpu.memory_space<semaphore_mem>>
    %56 = tpu.memref_squeeze %55 : memref<1x!tpu.dma_semaphore, #tpu.memory_space<semaphore_mem>> -> memref<!tpu.dma_semaphore, #tpu.memory_space<semaphore_mem>>
    tpu.enqueue_dma source(%arg8 : memref<128x128xbf16, #tpu.memory_space<any>>) target(%54 : memref<128x128xbf16, #tpu.memory_space<vmem>>) target_semaphore(%56 : memref<!tpu.dma_semaphore, #tpu.memory_space<semaphore_mem>>)
    %c1 = arith.constant 1 : index
    %c0_40 = arith.constant 0 : index
    %c0_41 = arith.constant 0 : index
    %57 = vector.load %arg10[%c1, %c0_40, %c0_41] : memref<2x128x128xbf16, #tpu.memory_space<vmem>>, vector<1x128x128xbf16>
    %58 = vector.shape_cast %57 : vector<1x128x128xbf16> to vector<128x128xbf16>
    %cst_42 = arith.constant dense<0.000000e+00> : vector<8x128xf32>
    %59 = tpu.matmul %48, %58, %cst_42 {dimension_numbers = #tpu.dot_dimension_numbers<[1], [0], [0], [1], [0, 0, 1, 1], [], []>} : vector<8x128xbf16>, vector<128x128xbf16>, vector<8x128xf32> -> vector<8x128xf32>
    %cst_43 = arith.constant dense<0.000000e+00> : vector<128xf32>
    %60 = vector.multi_reduction <add>, %59, %cst_43 [0] : vector<8x128xf32> to vector<128xf32>
    %61 = vector.shape_cast %60 : vector<128xf32> to vector<1x128xf32>
    %cst_44 = arith.constant 1.250000e-01 : f32
    %62 = vector.broadcast %cst_44 : f32 to vector<1x128xf32>
    %63 = arith.mulf %61, %62 : vector<1x128xf32>
    %64 = arith.mulf %59, %59 : vector<8x128xf32>
    %cst_45 = arith.constant dense<0.000000e+00> : vector<128xf32>
    %65 = vector.multi_reduction <add>, %64, %cst_45 [0] : vector<8x128xf32> to vector<128xf32>
    %66 = vector.shape_cast %65 : vector<128xf32> to vector<1x128xf32>
    %cst_46 = arith.constant 1.250000e-01 : f32
    %67 = vector.broadcast %cst_46 : f32 to vector<1x128xf32>
    %68 = arith.mulf %66, %67 : vector<1x128xf32>
    %69 = arith.mulf %63, %63 : vector<1x128xf32>
    %70 = arith.subf %68, %69 : vector<1x128xf32>
    %cst_47 = arith.constant 0.000000e+00 : f32
    %71 = vector.broadcast %cst_47 : f32 to vector<1x128xf32>
    %72 = arith.maximumf %70, %71 : vector<1x128xf32>
    %c0_48 = arith.constant 0 : index
    %c0_49 = arith.constant 0 : index
    %73 = vector.load %arg3[%c0_48, %c0_49] : memref<1x128xf32, #tpu.memory_space<vmem>>, vector<1x128xf32>
    %cst_50 = arith.constant 9.99999974E-6 : f32
    %74 = vector.broadcast %cst_50 : f32 to vector<1x128xf32>
    %75 = arith.addf %72, %74 : vector<1x128xf32>
    %76 = math.rsqrt %75 : vector<1x128xf32>
    %77 = arith.mulf %73, %76 : vector<1x128xf32>
    %c0_51 = arith.constant 0 : index
    %c0_52 = arith.constant 0 : index
    %78 = vector.load %arg4[%c0_51, %c0_52] : memref<1x128xf32, #tpu.memory_space<vmem>>, vector<1x128xf32>
    %79 = arith.mulf %77, %63 : vector<1x128xf32>
    %80 = arith.subf %78, %79 : vector<1x128xf32>
    %81 = vector.broadcast %77 : vector<1x128xf32> to vector<8x128xf32>
    %82 = arith.mulf %81, %59 : vector<8x128xf32>
    %83 = vector.broadcast %80 : vector<1x128xf32> to vector<8x128xf32>
    %84 = arith.addf %82, %83 : vector<8x128xf32>
    %cst_53 = arith.constant 0.000000e+00 : f32
    %85 = vector.broadcast %cst_53 : f32 to vector<8x128xf32>
    %86 = arith.maximumf %84, %85 : vector<8x128xf32>
    %87 = arith.truncf %86 : vector<8x128xf32> to vector<8x128xbf16>
    %c0_i32_54 = arith.constant 0 : i32
    %c0_i32_55 = arith.constant 0 : i32
    %c0_i32_56 = arith.constant 0 : i32
    %c0_i32_57 = arith.constant 0 : i32
    %88 = tpu.memref_slice %arg10[%c0_i32_54, %c0_i32_56, %c0_i32_57] : memref<2x128x128xbf16, #tpu.memory_space<vmem>> -> memref<1x128x128xbf16, #tpu.memory_space<vmem>>
    %89 = tpu.memref_squeeze %88 : memref<1x128x128xbf16, #tpu.memory_space<vmem>> -> memref<128x128xbf16, #tpu.memory_space<vmem>>
    %90 = tpu.memref_slice %arg11[%c0_i32_55] : memref<2x!tpu.dma_semaphore, #tpu.memory_space<semaphore_mem>> -> memref<1x!tpu.dma_semaphore, #tpu.memory_space<semaphore_mem>>
    %91 = tpu.memref_squeeze %90 : memref<1x!tpu.dma_semaphore, #tpu.memory_space<semaphore_mem>> -> memref<!tpu.dma_semaphore, #tpu.memory_space<semaphore_mem>>
    tpu.wait_dma2 semaphore(%91 : memref<!tpu.dma_semaphore, #tpu.memory_space<semaphore_mem>>) src(%arg8 : memref<128x128xbf16, #tpu.memory_space<any>>) dst(%89 : memref<128x128xbf16, #tpu.memory_space<vmem>>)
    %c0_58 = arith.constant 0 : index
    %c0_59 = arith.constant 0 : index
    %c0_60 = arith.constant 0 : index
    %92 = vector.load %arg10[%c0_58, %c0_59, %c0_60] : memref<2x128x128xbf16, #tpu.memory_space<vmem>>, vector<1x128x128xbf16>
    %93 = vector.shape_cast %92 : vector<1x128x128xbf16> to vector<128x128xbf16>
    %cst_61 = arith.constant dense<0.000000e+00> : vector<8x128xf32>
    %94 = tpu.matmul %87, %93, %cst_61 {dimension_numbers = #tpu.dot_dimension_numbers<[1], [0], [0], [1], [0, 0, 1, 1], [], []>} : vector<8x128xbf16>, vector<128x128xbf16>, vector<8x128xf32> -> vector<8x128xf32>
    %c0_62 = arith.constant 0 : index
    %c0_63 = arith.constant 0 : index
    %95 = vector.load %arg5[%c0_62, %c0_63] : memref<1x128xf32, #tpu.memory_space<vmem>>, vector<1x128xf32>
    %96 = vector.broadcast %95 : vector<1x128xf32> to vector<8x128xf32>
    %97 = arith.addf %94, %96 : vector<8x128xf32>
    %c0_64 = arith.constant 0 : index
    %c0_65 = arith.constant 0 : index
    %98 = vector.load %arg9[%c0_64, %c0_65] : memref<8x128xf32, #tpu.memory_space<vmem>>, vector<8x128xf32>
    tpu.vector_store %arg9[%c0_64, %c0_65], %97 {strides = array<i32>} : memref<8x128xf32, #tpu.memory_space<vmem>>, vector<8x128xf32>,
    return
  }
}

</mosaic_0001>

<bundles_post_ra>
// kernel: fc_generator_forward.1
= control target key start
LH: loop header
LB: loop body
LE: loop exit
PB: predicated region body
PF: predicated region fallthrough
CT: control target
= control target key end

     0   :  { %14 = vsyncpa [#allocation6], 0  ;;  %s969_s0 = inlined_call_operand.hbm [shape: f32[8,16], index: 0, kind: input, shape index: {}]   ;;  %s970_s1 = inlined_call_operand.vmem [shape: f32[1,128], index: 1, kind: input, shape index: {}]   ;;  %s971_s2 = inlined_call_operand.vmem [shape: f32[1,128], index: 2, kind: input, shape index: {}]   ;;  %s972_s3 = inlined_call_operand.vmem [shape: f32[1,128], index: 3, kind: input, shape index: {}]   ;;  %s973_s4 = inlined_call_operand.vmem [shape: f32[1,128], index: 4, kind: input, shape index: {}]   ;;  %s974_s5 = inlined_call_operand.hbm [shape: f32[1,128], index: 5, kind: input, shape index: {}]   ;;  %s975_s6 = inlined_call_operand.hbm [shape: bf16[128,128], index: 6, kind: input, shape index: {}]   ;;  %s976_s7 = inlined_call_operand.hbm [shape: bf16[128,128], index: 7, kind: input, shape index: {}]   ;;  %s977_s8 = inlined_call_operand.hbm [shape: bf16[128,128], index: 8, kind: input, shape index: {}]   ;;  %s978_s9 = inlined_call_operand.hbm [shape: f32[8,128], index: 9, kind: output, shape index: {}]  }
   0x1   :  { %15 = vsyncpa [#allocation9], 0 }
   0x2   :  { %16 = vsyncpa [#allocation7], 0  ;;  %s813_s30 = smov [#allocation5]   ;;  %s814_s11 = smov [#allocation8]  }
   0x3   :  { %s23_s10 = sshll.u32 %s813_s30, 4  ;;  %s41_s12 = sshll.u32 %s814_s11, 4  ;;  %s24_s10 = int_to_ptr.vmem [resolvable:$true] %s23_s10  ;;  %s42_s12 = int_to_ptr.vmem [resolvable:$true] %s41_s12 }
   0x4   :  { %s689_s13 = scalar_lea.vmem %s24_s10, 128  ;;  %p694_p1 = scmp.lt.s32.totalorder %s24_s10, %s24_s10 }
   0x5   :  { %p690_p0 = scmp.ne.s32.totalorder %s24_s10, %s689_s13  ;;  %p695_p2 = scmp.lt.s32.totalorder %s689_s13, %s689_s13 }
   0x7   :  { %p696_p3 = por %p695_p2, %p694_p1 }
   0x9   :  { %p697_p4 = pnand %p696_p3, %p690_p0 }
   0xb   :  { %700 = shalt.err (!%p697_p4)
}
   0xc   :  { %26 = dma.hbm_to_vmem [thread:$0]  %s969_s0, 128, %s24_s10, [#allocation6]  }
   0xd   :  { %s709_s16 = scalar_lea.vmem %s42_s12, 16  ;;  %s713_s17 = scalar_lea.vmem %s42_s12, 32 }
   0xe   :  { %p710_p5 = scmp.ne.s32.totalorder %s42_s12, %s709_s16  ;;  %p714_p6 = scmp.lt.s32.totalorder %s42_s12, %s42_s12 }
   0xf   :  { %p715_p7 = scmp.lt.s32.totalorder %s713_s17, %s709_s16 }
  0x11   :  { %p716_p8 = por %p715_p7, %p714_p6 }
  0x13   :  { %p717_p9 = pnand %p716_p8, %p710_p5 }
  0x15   :  { %720 = shalt.err (!%p717_p9)
}
  0x16   :  { %44 = dma.hbm_to_vmem [thread:$0]  %s974_s5, 16, %s42_s12, [#allocation9]  }
  0x17   :  { %801 = dma.done.wait [#allocation6], 128  }
  0x18   :  { %802 = vsyncadd [#allocation6], 4294967168 }
  0x19   :  { %803 = dma.done.wait [#allocation9], 16  }
  0x1a   :  { %804 = vsyncadd [#allocation9], 4294967280  ;;  %v815_v0 = vmov 0.0   ;;  %s816_s0 = smov [#allocation2]  }
  0x1b   :  { %63 = vst [vmem:[#allocation4] sm:$0xff] %v815_v0  ;;  %s59_s20 = sshll.u32 %s816_s0, 4  ;;  %s877_s20 = int_to_ptr.vmem [resolvable:$true] %s59_s20 }
  0x1c   :  { %s729_s21 = scalar_lea.vmem %s877_s20, 1024  ;;  %s733_s5 = scalar_lea.vmem %s877_s20, 2048 }
  0x1d   :  { %p881_p10 = scmp.ne.s32.totalorder %s877_s20, %s729_s21  ;;  %p734_p11 = scmp.lt.s32.totalorder %s877_s20, %s877_s20 }
  0x1e   :  { %p735_p12 = scmp.lt.s32.totalorder %s733_s5, %s729_s21 }
  0x20   :  { %p888_p13 = por %p735_p12, %p734_p11 }
  0x22   :  { %p737_p0 = pnand %p888_p13, %p881_p10 }
  0x24   :  { %740 = shalt.err (!%p737_p0)  }
  0x25   :  { %62 = dma.hbm_to_vmem [thread:$0]  %s975_s6, 1024, %s877_s20, [#allocation3]  ;;  %vm65_vm0 = vcmask 130048   ;;  %v64_v1 = vld [vmem:[#allocation5] sm:$0xff] }
  0x26   :  { %66 = vst.msk [vmem:[#allocation4] sm:$0xff] %vm65_vm0, %v64_v1 }
  0x2d   :  { %v67_v2 = vld [vmem:[#allocation4] sm:$0xff] }
  0x2e   :  { %v68_v3 = vpack.c.bf16 %v67_v2, %v67_v2 }
  0x2f   :  { %805 = dma.done.wait [#allocation3], 1024 }
  0x30   :  { %806 = vsyncadd [#allocation3], 4294966272  ;;  %586 = vmatprep.subr.bf16.mxu0 %v815_v0  ;;  %s817_s26 = smov [#allocation2 + $0x40]   ;;  %vm818_vm1 = vmmov 0  }
  0x31   :  { %s82_s27 = sshll.u32 %s817_s26, 4  ;;  %602 = vmatprep.mubr.msk.bf16.mxu0 %vm818_vm1, %v815_v0  ;;  %s83_s27 = int_to_ptr.vmem [resolvable:$true] %s82_s27 }
  0x32   :  { %s749_s28 = scalar_lea.vmem %s83_s27, 1024  ;;  %p754_p2 = scmp.lt.s32.totalorder %s83_s27, %s877_s20 }
  0x33   :  { %p750_p1 = scmp.ne.s32.totalorder %s83_s27, %s749_s28  ;;  %p755_p3 = scmp.lt.s32.totalorder %s733_s5, %s749_s28 }
  0x35   :  { %p756_p4 = por %p755_p3, %p754_p2 }
  0x37   :  { %p757_p5 = pnand %p756_p4, %p750_p1 }
  0x39   :  { %760 = shalt.err (!%p757_p5)  }
  0x3a   :  { %85 = dma.hbm_to_vmem [thread:$0]  %s976_s7, 1024, %s83_s27, [#allocation3 + $0x1]  ;;  %v216_v35 = vlaneseq  ;;  %v208_v37 = vld [vmem:[%s970_s1] sm:$0x1] }
  0x3b   :  { %v653_v4 = vld [vmem:[#allocation2 + $0x38] sm:$0xff]   ;;  %v654_v5 = vld [vmem:[#allocation2 + $0x30] sm:$0xff]   ;;  %v655_v6 = vld [vmem:[#allocation2 + $0x28] sm:$0xff]  }
  0x3c   :  { %587 = vmatpush3.bf16.msra.mxu0 %v653_v4  ;;  %v656_v7 = vld [vmem:[#allocation2 + $0x20] sm:$0xff]   ;;  %v657_v8 = vld [vmem:[#allocation2 + $0x18] sm:$0xff]   ;;  %v658_v9 = vld [vmem:[#allocation2 + $0x10] sm:$0xff]   ;;  %v217_v36 = vshrl.u32 %v216_v35, 7 }
  0x3d   :  { %588 = vmatprep.subr.bf16.mxu0 %v815_v0  ;;  %v659_v10 = vld [vmem:[#allocation2 + $0x8] sm:$0xff]   ;;  %v660_v11 = vld [vmem:[#allocation2] sm:$0xff]  }
  0x3e   :  { %v922_v38 = vsub.s32 0, %v217_v36  ;;  %v212_v41 = vld [vmem:[%s971_s2] sm:$0x1] }
  0x40   :  { %589 = vmatpush3.bf16.msra.mxu0 %v654_v5 }
  0x41   :  { %590 = vmatprep.subr.bf16.mxu0 %v815_v0 }
  0x44   :  { %591 = vmatpush3.bf16.msra.mxu0 %v655_v6 }
  0x45   :  { %592 = vmatprep.subr.bf16.mxu0 %v815_v0 }
  0x48   :  { %593 = vmatpush3.bf16.msra.mxu0 %v656_v7 }
  0x49   :  { %594 = vmatprep.subr.bf16.mxu0 %v815_v0 }
  0x4c   :  { %595 = vmatpush3.bf16.msra.mxu0 %v657_v8 }
  0x4d   :  { %596 = vmatprep.subr.bf16.mxu0 %v815_v0 }
  0x50   :  { %597 = vmatpush3.bf16.msra.mxu0 %v658_v9 }
  0x51   :  { %598 = vmatprep.subr.bf16.mxu0 %v815_v0 }
  0x54   :  { %599 = vmatpush3.bf16.msra.mxu0 %v659_v10 }
  0x55   :  { %600 = vmatprep.subr.bf16.mxu0 %v815_v0 }
  0x58   :  { %601 = vmatpush3.bf16.msra.mxu0 %v660_v11 }
  0x5b   :  { %603 = vmatmul.mubr.bf16.vlgmr.msra.gmra.mxu0 %v68_v3 }
 0x11b   :  { %v184_v12 = vpop.f32.mrf.mxu0 }
 0x11c   :  { %v190_v13 = vrot.slane %v184_v12, 4  ;;  %v197_v14 = vmul.f32 %v184_v12, %v184_v12 }
 0x11d   :  { %v604_v15 = vpop.f32.mrf.mxu0 }
 0x11e   :  { %v191_v16 = vadd.f32 %v190_v13, %v184_v12  ;;  %v198_v17 = vrot.slane %v197_v14, 4 }
 0x11f   :  { %v187_v18 = vpop.f32.mrf.mxu0 }
 0x120   :  { %v192_v19 = vrot.slane %v191_v16, 2  ;;  %v199_v20 = vadd.f32 %v198_v17, %v197_v14 }
 0x121   :  { %v605_v21 = vpop.f32.mrf.mxu0 }
 0x122   :  { %v193_v22 = vadd.f32 %v192_v19, %v191_v16  ;;  %v200_v23 = vrot.slane %v199_v20, 2 }
 0x124   :  { %v194_v24 = vrot.slane %v193_v22, 1  ;;  %v201_v25 = vadd.f32 %v200_v23, %v199_v20 }
 0x126   :  { %v195_v26 = vadd.f32 %v194_v24, %v193_v22  ;;  %v202_v27 = vrot.slane %v201_v25, 1 }
 0x128   :  { %v196_v28 = vmul.f32 0.125, %v195_v26  ;;  %v203_v29 = vadd.f32 %v202_v27, %v201_v25 }
 0x12a   :  { %v204_v30 = vmul.f32 0.125, %v203_v29  ;;  %v205_v31 = vmul.f32 %v196_v28, %v196_v28 }
 0x12c   :  { %v206_v32 = vsub.f32 %v204_v30, %v205_v31 }
 0x12e   :  { %v207_v33 = vmax.f32 %v206_v32, 0.0 }
 0x130   :  { %v209_v34 = vadd.f32 1e-05, %v207_v33 }
 0x132   :  { %661 = vrsqrt.f32 %v209_v34 }
 0x13f   :  { %v662_v39 = vpop.eup %661 }
 0x140   :  { %v211_v40 = vmul.f32 %v662_v39, %v208_v37 }
 0x142   :  { %v213_v42 = vmul.f32 %v211_v40, %v196_v28  ;;  %v219_v43 = vrot.slane %v211_v40, %v922_v38 }
 0x144   :  { %v214_v44 = vsub.f32 %v212_v41, %v213_v42  ;;  %v221_v45 = vmul.f32 %v219_v43, %v184_v12 }
 0x146   :  { %v226_v46 = vrot.slane %v214_v44, %v922_v38 }
 0x148   :  { %v228_v47 = vadd.f32 %v226_v46, %v221_v45 }
 0x14a   :  { %v229_v48 = vmax.f32 %v228_v47, 0.0 }
 0x14c   :  { %v230_v49 = vpack.c.bf16 %v229_v48, %v229_v48 }
 0x14d   :  { %807 = dma.done.wait [#allocation3 + $0x1], 1024 }
 0x14e   :  { %808 = vsyncadd [#allocation3 + $0x1], 4294966272  ;;  %606 = vmatprep.subr.bf16.mxu1 %v815_v0  ;;  %622 = vmatprep.mubr.msk.bf16.mxu1 %vm818_vm1, %v815_v0 }
 0x14f   :  { %780 = shalt.err (!%p737_p0)  }
 0x150   :  { %243 = dma.hbm_to_vmem [thread:$0]  %s977_s8, 1024, %s877_s20, [#allocation3]  ;;  %v366_v18 = vld [vmem:[%s972_s3] sm:$0x1] }
 0x151   :  { %v663_v50 = vld [vmem:[#allocation2 + $0x78] sm:$0xff]   ;;  %v664_v51 = vld [vmem:[#allocation2 + $0x70] sm:$0xff]   ;;  %v665_v52 = vld [vmem:[#allocation2 + $0x68] sm:$0xff]  }
 0x152   :  { %607 = vmatpush3.bf16.msra.mxu1 %v663_v50  ;;  %v666_v53 = vld [vmem:[#allocation2 + $0x60] sm:$0xff]   ;;  %v667_v54 = vld [vmem:[#allocation2 + $0x58] sm:$0xff]   ;;  %v668_v55 = vld [vmem:[#allocation2 + $0x50] sm:$0xff]  }
 0x153   :  { %608 = vmatprep.subr.bf16.mxu1 %v815_v0  ;;  %v669_v56 = vld [vmem:[#allocation2 + $0x48] sm:$0xff]   ;;  %v670_v57 = vld [vmem:[#allocation2 + $0x40] sm:$0xff]  }
 0x154   :  { %v370_v21 = vld [vmem:[%s973_s4] sm:$0x1] }
 0x156   :  { %609 = vmatpush3.bf16.msra.mxu1 %v664_v51 }
 0x157   :  { %610 = vmatprep.subr.bf16.mxu1 %v815_v0 }
 0x15a   :  { %611 = vmatpush3.bf16.msra.mxu1 %v665_v52 }
 0x15b   :  { %612 = vmatprep.subr.bf16.mxu1 %v815_v0 }
 0x15e   :  { %613 = vmatpush3.bf16.msra.mxu1 %v666_v53 }
 0x15f   :  { %614 = vmatprep.subr.bf16.mxu1 %v815_v0 }
 0x162   :  { %615 = vmatpush3.bf16.msra.mxu1 %v667_v54 }
 0x163   :  { %616 = vmatprep.subr.bf16.mxu1 %v815_v0 }
 0x166   :  { %617 = vmatpush3.bf16.msra.mxu1 %v668_v55 }
 0x167   :  { %618 = vmatprep.subr.bf16.mxu1 %v815_v0 }
 0x16a   :  { %619 = vmatpush3.bf16.msra.mxu1 %v669_v56 }
 0x16b   :  { %620 = vmatprep.subr.bf16.mxu1 %v815_v0 }
 0x16e   :  { %621 = vmatpush3.bf16.msra.mxu1 %v670_v57 }
 0x171   :  { %623 = vmatmul.mubr.bf16.vlgmr.msra.gmra.mxu1 %v230_v49 }
 0x231   :  { %v342_v58 = vpop.f32.mrf.mxu1 }
 0x232   :  { %v348_v59 = vrot.slane %v342_v58, 4  ;;  %v355_v60 = vmul.f32 %v342_v58, %v342_v58 }
 0x233   :  { %v624_v61 = vpop.f32.mrf.mxu1 }
 0x234   :  { %v349_v62 = vadd.f32 %v348_v59, %v342_v58  ;;  %v356_v63 = vrot.slane %v355_v60, 4 }
 0x235   :  { %v345_v1 = vpop.f32.mrf.mxu1 }
 0x236   :  { %v350_v2 = vrot.slane %v349_v62, 2  ;;  %v357_v3 = vadd.f32 %v356_v63, %v355_v60 }
 0x237   :  { %v625_v4 = vpop.f32.mrf.mxu1 }
 0x238   :  { %v351_v5 = vadd.f32 %v350_v2, %v349_v62  ;;  %v358_v6 = vrot.slane %v357_v3, 2 }
 0x23a   :  { %v352_v7 = vrot.slane %v351_v5, 1  ;;  %v359_v8 = vadd.f32 %v358_v6, %v357_v3 }
 0x23c   :  { %v353_v9 = vadd.f32 %v352_v7, %v351_v5  ;;  %v360_v10 = vrot.slane %v359_v8, 1 }
 0x23e   :  { %v354_v11 = vmul.f32 0.125, %v353_v9  ;;  %v361_v12 = vadd.f32 %v360_v10, %v359_v8 }
 0x240   :  { %v362_v13 = vmul.f32 0.125, %v361_v12  ;;  %v363_v14 = vmul.f32 %v354_v11, %v354_v11 }
 0x242   :  { %v364_v15 = vsub.f32 %v362_v13, %v363_v14 }
 0x244   :  { %v365_v16 = vmax.f32 %v364_v15, 0.0 }
 0x246   :  { %v367_v17 = vadd.f32 1e-05, %v365_v16 }
 0x248   :  { %671 = vrsqrt.f32 %v367_v17 }
 0x255   :  { %v672_v19 = vpop.eup %671 }
 0x256   :  { %v369_v20 = vmul.f32 %v672_v19, %v366_v18 }
 0x258   :  { %v371_v22 = vmul.f32 %v369_v20, %v354_v11  ;;  %v377_v23 = vrot.slane %v369_v20, %v922_v38 }
 0x25a   :  { %v372_v24 = vsub.f32 %v370_v21, %v371_v22  ;;  %v379_v25 = vmul.f32 %v377_v23, %v342_v58 }
 0x25c   :  { %v384_v26 = vrot.slane %v372_v24, %v922_v38 }
 0x25e   :  { %v386_v27 = vadd.f32 %v384_v26, %v379_v25 }
 0x260   :  { %v387_v28 = vmax.f32 %v386_v27, 0.0 }
 0x262   :  { %v388_v29 = vpack.c.bf16 %v387_v28, %v387_v28 }
 0x263   :  { %809 = dma.done.wait [#allocation3], 1024 }
 0x264   :  { %810 = vsyncadd [#allocation3], 4294966272  ;;  %626 = vmatprep.subr.bf16.mxu0 %v815_v0  ;;  %642 = vmatprep.mubr.msk.bf16.mxu0 %vm818_vm1, %v815_v0  ;;  %v673_v30 = vld [vmem:[#allocation2 + $0x38] sm:$0xff]   ;;  %v674_v31 = vld [vmem:[#allocation2 + $0x30] sm:$0xff]   ;;  %s819_s3 = smov [#allocation10]  }
 0x265   :  { %627 = vmatpush3.bf16.msra.mxu0 %v673_v30  ;;  %v675_v32 = vld [vmem:[#allocation2 + $0x28] sm:$0xff]   ;;  %v676_v33 = vld [vmem:[#allocation2 + $0x20] sm:$0xff]   ;;  %v677_v34 = vld [vmem:[#allocation2 + $0x18] sm:$0xff]   ;;  %s509_s4 = sshll.u32 %s819_s3, 4  ;;  %s510_s4 = int_to_ptr.vmem [resolvable:$true] %s509_s4 }
 0x266   :  { %628 = vmatprep.subr.bf16.mxu0 %v815_v0  ;;  %v678_v35 = vld [vmem:[#allocation2 + $0x10] sm:$0xff]   ;;  %v679_v36 = vld [vmem:[#allocation2 + $0x8] sm:$0xff]   ;;  %v680_v37 = vld [vmem:[#allocation2] sm:$0xff]   ;;  %s781_s15 = scalar_lea.vmem %s510_s4, 128  ;;  %p786_p7 = scmp.lt.s32.totalorder %s510_s4, %s510_s4 }
 0x267   :  { %v548_v38 = vld [vmem:[#allocation8] ss:$0 sm:$0xff]  ;;  %p782_p6 = scmp.ne.s32.totalorder %s510_s4, %s781_s15  ;;  %p787_p8 = scmp.lt.s32.totalorder %s781_s15, %s781_s15 }
 0x269   :  { %629 = vmatpush3.bf16.msra.mxu0 %v674_v31  ;;  %p788_p9 = por %p787_p8, %p786_p7 }
 0x26a   :  { %630 = vmatprep.subr.bf16.mxu0 %v815_v0 }
 0x26b   :  { %p789_p10 = pnand %p788_p9, %p782_p6 }
 0x26d   :  { %631 = vmatpush3.bf16.msra.mxu0 %v675_v32 }
 0x26e   :  { %632 = vmatprep.subr.bf16.mxu0 %v815_v0 }
 0x271   :  { %633 = vmatpush3.bf16.msra.mxu0 %v676_v33 }
 0x272   :  { %634 = vmatprep.subr.bf16.mxu0 %v815_v0 }
 0x275   :  { %635 = vmatpush3.bf16.msra.mxu0 %v677_v34 }
 0x276   :  { %636 = vmatprep.subr.bf16.mxu0 %v815_v0 }
 0x279   :  { %637 = vmatpush3.bf16.msra.mxu0 %v678_v35 }
 0x27a   :  { %638 = vmatprep.subr.bf16.mxu0 %v815_v0 }
 0x27d   :  { %639 = vmatpush3.bf16.msra.mxu0 %v679_v36 }
 0x27e   :  { %640 = vmatprep.subr.bf16.mxu0 %v815_v0 }
 0x281   :  { %641 = vmatpush3.bf16.msra.mxu0 %v680_v37 }
 0x284   :  { %643 = vmatmul.mubr.bf16.vlgmr.msra.gmra.mxu0 %v388_v29 }
 0x344   :  { %v496_v39 = vpop.f32.mrf.mxu0 }
 0x345   :  { %v497_v40 = vadd.f32 %v548_v38, %v496_v39 }
 0x346   :  { %v644_v41 = vpop.f32.mrf.mxu0 }
 0x347   :  { %502 = vst [vmem:[#allocation10] sm:$0xff] %v497_v40 }
 0x348   :  { %v499_v42 = vpop.f32.mrf.mxu0 }
 0x349   :  { %792 = shalt.err (!%p789_p10)
}
 0x34a   :  { %512 = dma.vmem_to_hbm [thread:$0]  %s510_s4, 128, %s978_s9, [#allocation7]   ;;  %v645_v0 = vpop.f32.mrf.mxu0 }
 0x34b   :  { %811 = dma.done.wait [#allocation7], 128  }
 0x34c   :  { %812 = vsyncadd [#allocation7], 4294967168 }
 0x34d   :  { %516 = vsyncpa [#allocation6], 1 }
 0x34e   :  { %517 = vsyncpa [#allocation9], 1 }
 0x34f   :  { %518 = vsyncpa [#allocation7], 1 }
 0x350   :  { %519 = vsyncmov [#allocation3] }
 0x353   :  { %s520_s18 = vpop.sfrf %519 }
 0x354   :  { %p557_p11 = scmp.ne.s32.totalorder %s520_s18, 0 }
 0x356   :  { %524 = shalt.err (%p557_p11)  }
 0x357   :  { %526 = vsyncmov [#allocation3 + $0x1] }
 0x35a   :  { %s527_s19 = vpop.sfrf %526 }
 0x35b   :  { %p558_p12 = scmp.ne.s32.totalorder %s527_s19, 0 }
 0x35d   :  { %531 = shalt.err (%p558_p12)  }

</bundles_post_ra>
